<compile_context>
chip_gen: v6e
topology: v6e:2x2x1
jax: 0.10.0
libtpu: 0.0.40
codegen_flags: <defaults>
</compile_context>

<pallas_src>
import math

import jax
import jax.numpy as jnp
from jax.experimental import pallas as pl
from jax.experimental.pallas import tpu as pltpu


RMS_EPS = 1e-6


def _round_up(n: int, m: int) -> int:
    return (n + m - 1) // m * m


def _cdiv(a: int, b: int) -> int:
    return (a + b - 1) // b


def _pscn_pair_kernel(x_ref, *refs):
    """Pair-layout PSCN forward.

    refs = (w0, bg0, w1, bg1, ..., out_ref)
      w_i : (K_i, 2*out_i) bf16 block-diagonal pair weight.  For i >= 1 the
            rows covering the previously *kept* halves are zero, so the FULL
            previous pair activation is a valid matmul input (no lane slice).
      bg_i: (2, 2*out_i) f32; row 0 = bias, row 1 = RMSNorm gain
            (each duplicated across the two lane-halves).
    """
    out_ref = refs[-1]
    param_refs = refs[:-1]
    depth = len(param_refs) // 2

    h = x_ref[...]                                    # (TP, 2*in_dim) bf16
    parts_even, parts_odd = [], []
    for i in range(depth):
        w = param_refs[2 * i][...]                    # (K_i, 2*d) bf16
        bg = param_refs[2 * i + 1][...]               # (2, 2*d)  f32

        # Linear on the MXU: bf16 operands, f32 accumulation.
        z = jnp.dot(h.astype(jnp.bfloat16), w,
                    preferred_element_type=jnp.float32) + bg[0:1, :]
        # SiLU (VPU + EUP).
        a = z * jax.nn.sigmoid(z)

        # Per-sample RMSNorm: mean of squares over each lane-half separately,
        # computed with one block-diag-ones matmul (MXU is idle here).
        d2 = a.shape[-1]
        d = d2 // 2
        ri = jax.lax.broadcasted_iota(jnp.int32, (d2, d2), 0)
        ci = jax.lax.broadcasted_iota(jnp.int32, (d2, d2), 1)
        m_r = (ri < d).astype(jnp.float32)
        m_c = (ci < d).astype(jnp.float32)
        seg = m_r * m_c + (1.0 - m_r) * (1.0 - m_c)   # block-diagonal ones
        ms = jnp.dot(a * a, seg, preferred_element_type=jnp.float32) * (1.0 / d)
        a = a * jax.lax.rsqrt(ms + RMS_EPS) * bg[1:2, :]

        keep = d if i == depth - 1 else d // 2
        parts_even.append(a[:, :keep])                # even sample's kept part
        parts_odd.append(a[:, d:d + keep])            # odd  sample's kept part
        h = a                                         # next pair weight has
                                                      # zero rows on kept lanes

    # One dense (TP, 2*output_dim) store: [even sample out | odd sample out].
    out_ref[...] = jnp.concatenate(parts_even + parts_odd,
                                   axis=-1).astype(out_ref.dtype)


def pscn_forward(x, kernel_params, output_dim, block_b=2048):
    """x: (B, input_dim); kernel_params from pack_pscn_pair_params.

    Returns (B, output_dim) in bf16 (halves output HBM traffic).  Supplying x
    already in bf16 avoids one extra cast pass; f32 input is accepted.
    """
    B, in_dim = x.shape
    if x.dtype != jnp.bfloat16:
        x = x.astype(jnp.bfloat16)

    # --- pair the batch: pair row q = samples (2q, 2q+1), free reshape -------
    Be = _round_up(B, 2)
    if Be != B:
        x = jnp.pad(x, ((0, Be - B), (0, 0)))
    P = Be // 2
    x_pair = x.reshape(P, 2 * in_dim)

    # --- tiling: pick the grid first (minimal padding), then the tile --------
    # Force an even grid when splitting so ("parallel",) shards across both
    # v7x TensorCores; TP is a multiple of 16 sublanes (bf16 tiles).
    block_p = max(16, block_b // 2)
    g = _cdiv(P, block_p)
    if g == 1 and P >= 32:
        g = 2
    if g > 1 and g % 2 == 1:
        g += 1
    TP = _round_up(_cdiv(P, g), 16)
    Pp = g * TP
    if Pp != P:
        x_pair = jnp.pad(x_pair, ((0, Pp - P), (0, 0)))

    in_specs = [pl.BlockSpec((TP, 2 * in_dim), lambda i: (i, 0))]
    flat_params = []
    for (w, bg) in kernel_params:
        in_specs.append(pl.BlockSpec(w.shape, lambda i: (0, 0)))
        in_specs.append(pl.BlockSpec(bg.shape, lambda i: (0, 0)))
        flat_params += [w, bg]

    out_pair = pl.pallas_call(
        _pscn_pair_kernel,
        out_shape=jax.ShapeDtypeStruct((Pp, 2 * output_dim), jnp.bfloat16),
        grid=(g,),
        in_specs=in_specs,
        out_specs=pl.BlockSpec((TP, 2 * output_dim), lambda i: (i, 0)),
        compiler_params=pltpu.CompilerParams(
            dimension_semantics=("parallel",)),
    )(x_pair, *flat_params)

    # (Pp, 2*O) row-major is bit-identical to (2*Pp, O): free reshape back.
    return out_pair.reshape(2 * Pp, output_dim)[:B]


def init_pscn_params(key, input_dim, output_dim, depth):
    """Natural-shape params mirroring the PyTorch module: orthogonal weights
    (gain sqrt(2)), zero biases, RMSNorm weights = 1.  Per layer:
    (W (in,out) f32 == torch W.T, b (1,out) f32, g (1,out) f32)."""
    min_dim = 2 ** (depth - 1)
    assert depth >= 1
    assert output_dim >= min_dim and output_dim % min_dim == 0

    ortho = jax.nn.initializers.orthogonal(scale=math.sqrt(2.0))
    params = []
    in_dim, out_dim = input_dim, output_dim
    for _ in range(depth):
        key, wk = jax.random.split(key)
        w = ortho(wk, (in_dim, out_dim), jnp.float32)
        b = jnp.zeros((1, out_dim), jnp.float32)
        g = jnp.ones((1, out_dim), jnp.float32)            # RMSNorm weight
        params.append((w, b, g))
        in_dim = out_dim // 2
        out_dim //= 2
    return params


def pack_pscn_pair_params(params):
    """Natural params -> pair-layout kernel params.

    Layer 0:    W_pair = [[W, 0], [0, W]]                       (2*in, 2*out)
    Layer i>=1: previous pair activation has width 4k (k = in_i); the kept
                ("rest") halves live at lanes [k:2k] (even sample) and
                [3k:4k] (odd sample), so W_pair is zero except
                rows k:2k -> cols :out and rows 3k:4k -> cols out:.
    Weights bf16; bias+gain packed as (2, 2*out) f32 (each half duplicated).
    """
    kparams = []
    for i, (w, b, g) in enumerate(params):
        k, n = w.shape
        if i == 0:
            wp = jnp.zeros((2 * k, 2 * n), jnp.float32)
            wp = wp.at[:k, :n].set(w).at[k:, n:].set(w)
        else:
            wp = jnp.zeros((4 * k, 2 * n), jnp.float32)
            wp = wp.at[k:2 * k, :n].set(w).at[3 * k:, n:].set(w)
        bg = jnp.concatenate(
            [jnp.concatenate([b, b], axis=-1),
             jnp.concatenate([g, g], axis=-1)], axis=0).astype(jnp.float32)
        kparams.append((wp.astype(jnp.bfloat16), bg))
    return kparams


def pscn_reference(x, params):
    """Pure-JAX reference of the PSCN forward (module semantics; matmul
    operands rounded to bf16 to mirror the kernel's MXU precision)."""
    h = x.astype(jnp.float32)
    parts = []
    depth = len(params)
    for i, (w, b, g) in enumerate(params):
        z = jnp.dot(h.astype(jnp.bfloat16).astype(jnp.float32),
                    w.astype(jnp.bfloat16).astype(jnp.float32)) + b
        a = z * jax.nn.sigmoid(z)
        ms = jnp.mean(a * a, axis=-1, keepdims=True)
        a = a * jax.lax.rsqrt(ms + RMS_EPS) * g
        if i < depth - 1:
            half = a.shape[-1] // 2
            parts.append(a[:, :half])
            h = a[:, half:]
        else:
            parts.append(a)
    return jnp.concatenate(parts, axis=-1)


if __name__ == "__main__":
    # PSCN(input_dim=32, output_dim=64, depth=3)
    INPUT_DIM, OUTPUT_DIM, DEPTH = 32, 64, 3

    key = jax.random.PRNGKey(0)
    key, xk, xk2 = jax.random.split(key, 3)
    params = init_pscn_params(key, INPUT_DIM, OUTPUT_DIM, DEPTH)
    kparams = pack_pscn_pair_params(params)

    # --- small batch (single-step grid, latency case) ---
    B = 8
    x = jax.random.normal(xk, (B, INPUT_DIM), jnp.float32)
    out = jax.block_until_ready(pscn_forward(x, kparams, OUTPUT_DIM))
    ref = pscn_reference(x, params)
    assert out.shape == (B, OUTPUT_DIM)
    assert jnp.allclose(out.astype(jnp.float32), ref, rtol=2e-2, atol=2e-2), \
        "mismatch (B=8)"

    # --- larger, non-multiple batch: multi-step even grid + padding path ---
    B2 = 500
    x2 = jax.random.normal(xk2, (B2, INPUT_DIM), jnp.float32)
    out2 = jax.block_until_ready(
        pscn_forward(x2, kparams, OUTPUT_DIM, block_b=128))
    ref2 = pscn_reference(x2, params)
    assert out2.shape == (B2, OUTPUT_DIM)
    assert jnp.allclose(out2.astype(jnp.float32), ref2, rtol=2e-2, atol=2e-2), \
        "mismatch (B=500)"

    print("KERNEL_OK")
</pallas_src>

<mosaic_0001>
module attributes {stable_mosaic.version = 11 : i64} {
  func.func @_pscn_pair_kernel(%arg0: i32, %arg1: memref<16x64xbf16, #tpu.memory_space<vmem>>, %arg2: memref<64x128xbf16, #tpu.memory_space<vmem>>, %arg3: memref<2x128xf32, #tpu.memory_space<vmem>>, %arg4: memref<128x64xbf16, #tpu.memory_space<vmem>>, %arg5: memref<2x64xf32, #tpu.memory_space<vmem>>, %arg6: memref<64x32xbf16, #tpu.memory_space<vmem>>, %arg7: memref<2x32xf32, #tpu.memory_space<vmem>>, %arg8: memref<16x128xbf16, #tpu.memory_space<vmem>>) attributes {dimension_semantics = [#tpu.dimension_semantics<parallel>], iteration_bounds = array<i64: 1>, scalar_prefetch = 0 : i64, scratch_operands = 0 : i64, tpu.core_type = #tpu.core_type<tc>, window_params = [{transform_indices = @transform_0, window_bounds = array<i64: 16, 64>}, {pipeline_mode = #tpu.pipeline_mode<synchronous>, transform_indices = @transform_1, window_bounds = array<i64: 64, 128>}, {pipeline_mode = #tpu.pipeline_mode<synchronous>, transform_indices = @transform_2, window_bounds = array<i64: 2, 128>}, {pipeline_mode = #tpu.pipeline_mode<synchronous>, transform_indices = @transform_3, window_bounds = array<i64: 128, 64>}, {pipeline_mode = #tpu.pipeline_mode<synchronous>, transform_indices = @transform_4, window_bounds = array<i64: 2, 64>}, {pipeline_mode = #tpu.pipeline_mode<synchronous>, transform_indices = @transform_5, window_bounds = array<i64: 64, 32>}, {pipeline_mode = #tpu.pipeline_mode<synchronous>, transform_indices = @transform_6, window_bounds = array<i64: 2, 32>}, {transform_indices = @transform_7, window_bounds = array<i64: 16, 128>}]} {
    %c0 = arith.constant 0 : index
    %c0_0 = arith.constant 0 : index
    %0 = vector.load %arg1[%c0, %c0_0] : memref<16x64xbf16, #tpu.memory_space<vmem>>, vector<16x64xbf16>
    %c0_1 = arith.constant 0 : index
    %c0_2 = arith.constant 0 : index
    %1 = vector.load %arg2[%c0_1, %c0_2] : memref<64x128xbf16, #tpu.memory_space<vmem>>, vector<64x128xbf16>
    %c0_3 = arith.constant 0 : index
    %c0_4 = arith.constant 0 : index
    %2 = vector.load %arg3[%c0_3, %c0_4] : memref<2x128xf32, #tpu.memory_space<vmem>>, vector<2x128xf32>
    %cst = arith.constant dense<0.000000e+00> : vector<16x128xf32>
    %3 = tpu.matmul %0, %1, %cst {dimension_numbers = #tpu.dot_dimension_numbers<[1], [0], [0], [1], [0, 0, 1, 1], [], []>} : vector<16x64xbf16>, vector<64x128xbf16>, vector<16x128xf32> -> vector<16x128xf32>
    %4 = vector.extract_strided_slice %2 {offsets = [0, 0], sizes = [1, 128], strides = [1, 1]} : vector<2x128xf32> to vector<1x128xf32>
    %5 = vector.broadcast %4 : vector<1x128xf32> to vector<16x128xf32>
    %6 = arith.addf %3, %5 : vector<16x128xf32>
    %7 = arith.negf %6 : vector<16x128xf32>
    %8 = math.exp %7 : vector<16x128xf32>
    %cst_5 = arith.constant 1.000000e+00 : f32
    %9 = vector.broadcast %cst_5 : f32 to vector<16x128xf32>
    %10 = arith.addf %9, %8 : vector<16x128xf32>
    %11 = arith.divf %9, %10 : vector<16x128xf32>
    %12 = arith.mulf %6, %11 : vector<16x128xf32>
    %13 = tpu.iota {dimensions = array<i32: 0>} : vector<128x128xi32>
    %14 = tpu.iota {dimensions = array<i32: 1>} : vector<128x128xi32>
    %c64_i32 = arith.constant 64 : i32
    %15 = vector.broadcast %c64_i32 : i32 to vector<128x128xi32>
    %16 = arith.cmpi slt, %13, %15 : vector<128x128xi32>
    %17 = arith.extui %16 : vector<128x128xi1> to vector<128x128xi32>
    %18 = arith.sitofp %17 : vector<128x128xi32> to vector<128x128xf32>
    %c64_i32_6 = arith.constant 64 : i32
    %19 = vector.broadcast %c64_i32_6 : i32 to vector<128x128xi32>
    %20 = arith.cmpi slt, %14, %19 : vector<128x128xi32>
    %21 = arith.extui %20 : vector<128x128xi1> to vector<128x128xi32>
    %22 = arith.sitofp %21 : vector<128x128xi32> to vector<128x128xf32>
    %23 = arith.mulf %18, %22 : vector<128x128xf32>
    %cst_7 = arith.constant 1.000000e+00 : f32
    %24 = vector.broadcast %cst_7 : f32 to vector<128x128xf32>
    %25 = arith.subf %24, %18 : vector<128x128xf32>
    %cst_8 = arith.constant 1.000000e+00 : f32
    %26 = vector.broadcast %cst_8 : f32 to vector<128x128xf32>
    %27 = arith.subf %26, %22 : vector<128x128xf32>
    %28 = arith.mulf %25, %27 : vector<128x128xf32>
    %29 = arith.addf %23, %28 : vector<128x128xf32>
    %30 = arith.mulf %12, %12 : vector<16x128xf32>
    %cst_9 = arith.constant dense<0.000000e+00> : vector<16x128xf32>
    %31 = tpu.matmul %30, %29, %cst_9 {dimension_numbers = #tpu.dot_dimension_numbers<[1], [0], [0], [1], [0, 0, 1, 1], [], []>} : vector<16x128xf32>, vector<128x128xf32>, vector<16x128xf32> -> vector<16x128xf32>
    %cst_10 = arith.constant 1.562500e-02 : f32
    %32 = vector.broadcast %cst_10 : f32 to vector<16x128xf32>
    %33 = arith.mulf %31, %32 : vector<16x128xf32>
    %cst_11 = arith.constant 9.99999997E-7 : f32
    %34 = vector.broadcast %cst_11 : f32 to vector<16x128xf32>
    %35 = arith.addf %33, %34 : vector<16x128xf32>
    %36 = math.rsqrt %35 : vector<16x128xf32>
    %37 = arith.mulf %12, %36 : vector<16x128xf32>
    %38 = vector.extract_strided_slice %2 {offsets = [1, 0], sizes = [1, 128], strides = [1, 1]} : vector<2x128xf32> to vector<1x128xf32>
    %39 = vector.broadcast %38 : vector<1x128xf32> to vector<16x128xf32>
    %40 = arith.mulf %37, %39 : vector<16x128xf32>
    %41 = vector.extract_strided_slice %40 {offsets = [0, 0], sizes = [16, 32], strides = [1, 1]} : vector<16x128xf32> to vector<16x32xf32>
    %42 = vector.extract_strided_slice %40 {offsets = [0, 64], sizes = [16, 32], strides = [1, 1]} : vector<16x128xf32> to vector<16x32xf32>
    %c0_12 = arith.constant 0 : index
    %c0_13 = arith.constant 0 : index
    %43 = vector.load %arg4[%c0_12, %c0_13] : memref<128x64xbf16, #tpu.memory_space<vmem>>, vector<128x64xbf16>
    %c0_14 = arith.constant 0 : index
    %c0_15 = arith.constant 0 : index
    %44 = vector.load %arg5[%c0_14, %c0_15] : memref<2x64xf32, #tpu.memory_space<vmem>>, vector<2x64xf32>
    %45 = arith.truncf %40 : vector<16x128xf32> to vector<16x128xbf16>
    %cst_16 = arith.constant dense<0.000000e+00> : vector<16x64xf32>
    %46 = tpu.matmul %45, %43, %cst_16 {dimension_numbers = #tpu.dot_dimension_numbers<[1], [0], [0], [1], [0, 0, 1, 1], [], []>} : vector<16x128xbf16>, vector<128x64xbf16>, vector<16x64xf32> -> vector<16x64xf32>
    %47 = vector.extract_strided_slice %44 {offsets = [0, 0], sizes = [1, 64], strides = [1, 1]} : vector<2x64xf32> to vector<1x64xf32>
    %48 = vector.broadcast %47 : vector<1x64xf32> to vector<16x64xf32>
    %49 = arith.addf %46, %48 : vector<16x64xf32>
    %50 = arith.negf %49 : vector<16x64xf32>
    %51 = math.exp %50 : vector<16x64xf32>
    %cst_17 = arith.constant 1.000000e+00 : f32
    %52 = vector.broadcast %cst_17 : f32 to vector<16x64xf32>
    %53 = arith.addf %52, %51 : vector<16x64xf32>
    %54 = arith.divf %52, %53 : vector<16x64xf32>
    %55 = arith.mulf %49, %54 : vector<16x64xf32>
    %56 = tpu.iota {dimensions = array<i32: 0>} : vector<64x64xi32>
    %57 = tpu.iota {dimensions = array<i32: 1>} : vector<64x64xi32>
    %c32_i32 = arith.constant 32 : i32
    %58 = vector.broadcast %c32_i32 : i32 to vector<64x64xi32>
    %59 = arith.cmpi slt, %56, %58 : vector<64x64xi32>
    %60 = arith.extui %59 : vector<64x64xi1> to vector<64x64xi32>
    %61 = arith.sitofp %60 : vector<64x64xi32> to vector<64x64xf32>
    %c32_i32_18 = arith.constant 32 : i32
    %62 = vector.broadcast %c32_i32_18 : i32 to vector<64x64xi32>
    %63 = arith.cmpi slt, %57, %62 : vector<64x64xi32>
    %64 = arith.extui %63 : vector<64x64xi1> to vector<64x64xi32>
    %65 = arith.sitofp %64 : vector<64x64xi32> to vector<64x64xf32>
    %66 = arith.mulf %61, %65 : vector<64x64xf32>
    %cst_19 = arith.constant 1.000000e+00 : f32
    %67 = vector.broadcast %cst_19 : f32 to vector<64x64xf32>
    %68 = arith.subf %67, %61 : vector<64x64xf32>
    %cst_20 = arith.constant 1.000000e+00 : f32
    %69 = vector.broadcast %cst_20 : f32 to vector<64x64xf32>
    %70 = arith.subf %69, %65 : vector<64x64xf32>
    %71 = arith.mulf %68, %70 : vector<64x64xf32>
    %72 = arith.addf %66, %71 : vector<64x64xf32>
    %73 = arith.mulf %55, %55 : vector<16x64xf32>
    %cst_21 = arith.constant dense<0.000000e+00> : vector<16x64xf32>
    %74 = tpu.matmul %73, %72, %cst_21 {dimension_numbers = #tpu.dot_dimension_numbers<[1], [0], [0], [1], [0, 0, 1, 1], [], []>} : vector<16x64xf32>, vector<64x64xf32>, vector<16x64xf32> -> vector<16x64xf32>
    %cst_22 = arith.constant 3.125000e-02 : f32
    %75 = vector.broadcast %cst_22 : f32 to vector<16x64xf32>
    %76 = arith.mulf %74, %75 : vector<16x64xf32>
    %cst_23 = arith.constant 9.99999997E-7 : f32
    %77 = vector.broadcast %cst_23 : f32 to vector<16x64xf32>
    %78 = arith.addf %76, %77 : vector<16x64xf32>
    %79 = math.rsqrt %78 : vector<16x64xf32>
    %80 = arith.mulf %55, %79 : vector<16x64xf32>
    %81 = vector.extract_strided_slice %44 {offsets = [1, 0], sizes = [1, 64], strides = [1, 1]} : vector<2x64xf32> to vector<1x64xf32>
    %82 = vector.broadcast %81 : vector<1x64xf32> to vector<16x64xf32>
    %83 = arith.mulf %80, %82 : vector<16x64xf32>
    %84 = vector.extract_strided_slice %83 {offsets = [0, 0], sizes = [16, 16], strides = [1, 1]} : vector<16x64xf32> to vector<16x16xf32>
    %85 = vector.extract_strided_slice %83 {offsets = [0, 32], sizes = [16, 16], strides = [1, 1]} : vector<16x64xf32> to vector<16x16xf32>
    %c0_24 = arith.constant 0 : index
    %c0_25 = arith.constant 0 : index
    %86 = vector.load %arg6[%c0_24, %c0_25] : memref<64x32xbf16, #tpu.memory_space<vmem>>, vector<64x32xbf16>
    %c0_26 = arith.constant 0 : index
    %c0_27 = arith.constant 0 : index
    %87 = vector.load %arg7[%c0_26, %c0_27] : memref<2x32xf32, #tpu.memory_space<vmem>>, vector<2x32xf32>
    %88 = arith.truncf %83 : vector<16x64xf32> to vector<16x64xbf16>
    %cst_28 = arith.constant dense<0.000000e+00> : vector<16x32xf32>
    %89 = tpu.matmul %88, %86, %cst_28 {dimension_numbers = #tpu.dot_dimension_numbers<[1], [0], [0], [1], [0, 0, 1, 1], [], []>} : vector<16x64xbf16>, vector<64x32xbf16>, vector<16x32xf32> -> vector<16x32xf32>
    %90 = vector.extract_strided_slice %87 {offsets = [0, 0], sizes = [1, 32], strides = [1, 1]} : vector<2x32xf32> to vector<1x32xf32>
    %91 = vector.broadcast %90 : vector<1x32xf32> to vector<16x32xf32>
    %92 = arith.addf %89, %91 : vector<16x32xf32>
    %93 = arith.negf %92 : vector<16x32xf32>
    %94 = math.exp %93 : vector<16x32xf32>
    %cst_29 = arith.constant 1.000000e+00 : f32
    %95 = vector.broadcast %cst_29 : f32 to vector<16x32xf32>
    %96 = arith.addf %95, %94 : vector<16x32xf32>
    %97 = arith.divf %95, %96 : vector<16x32xf32>
    %98 = arith.mulf %92, %97 : vector<16x32xf32>
    %99 = tpu.iota {dimensions = array<i32: 0>} : vector<32x32xi32>
    %100 = tpu.iota {dimensions = array<i32: 1>} : vector<32x32xi32>
    %c16_i32 = arith.constant 16 : i32
    %101 = vector.broadcast %c16_i32 : i32 to vector<32x32xi32>
    %102 = arith.cmpi slt, %99, %101 : vector<32x32xi32>
    %103 = arith.extui %102 : vector<32x32xi1> to vector<32x32xi32>
    %104 = arith.sitofp %103 : vector<32x32xi32> to vector<32x32xf32>
    %c16_i32_30 = arith.constant 16 : i32
    %105 = vector.broadcast %c16_i32_30 : i32 to vector<32x32xi32>
    %106 = arith.cmpi slt, %100, %105 : vector<32x32xi32>
    %107 = arith.extui %106 : vector<32x32xi1> to vector<32x32xi32>
    %108 = arith.sitofp %107 : vector<32x32xi32> to vector<32x32xf32>
    %109 = arith.mulf %104, %108 : vector<32x32xf32>
    %cst_31 = arith.constant 1.000000e+00 : f32
    %110 = vector.broadcast %cst_31 : f32 to vector<32x32xf32>
    %111 = arith.subf %110, %104 : vector<32x32xf32>
    %cst_32 = arith.constant 1.000000e+00 : f32
    %112 = vector.broadcast %cst_32 : f32 to vector<32x32xf32>
    %113 = arith.subf %112, %108 : vector<32x32xf32>
    %114 = arith.mulf %111, %113 : vector<32x32xf32>
    %115 = arith.addf %109, %114 : vector<32x32xf32>
    %116 = arith.mulf %98, %98 : vector<16x32xf32>
    %cst_33 = arith.constant dense<0.000000e+00> : vector<16x32xf32>
    %117 = tpu.matmul %116, %115, %cst_33 {dimension_numbers = #tpu.dot_dimension_numbers<[1], [0], [0], [1], [0, 0, 1, 1], [], []>} : vector<16x32xf32>, vector<32x32xf32>, vector<16x32xf32> -> vector<16x32xf32>
    %cst_34 = arith.constant 6.250000e-02 : f32
    %118 = vector.broadcast %cst_34 : f32 to vector<16x32xf32>
    %119 = arith.mulf %117, %118 : vector<16x32xf32>
    %cst_35 = arith.constant 9.99999997E-7 : f32
    %120 = vector.broadcast %cst_35 : f32 to vector<16x32xf32>
    %121 = arith.addf %119, %120 : vector<16x32xf32>
    %122 = math.rsqrt %121 : vector<16x32xf32>
    %123 = arith.mulf %98, %122 : vector<16x32xf32>
    %124 = vector.extract_strided_slice %87 {offsets = [1, 0], sizes = [1, 32], strides = [1, 1]} : vector<2x32xf32> to vector<1x32xf32>
    %125 = vector.broadcast %124 : vector<1x32xf32> to vector<16x32xf32>
    %126 = arith.mulf %123, %125 : vector<16x32xf32>
    %127 = vector.extract_strided_slice %126 {offsets = [0, 0], sizes = [16, 16], strides = [1, 1]} : vector<16x32xf32> to vector<16x16xf32>
    %128 = vector.extract_strided_slice %126 {offsets = [0, 16], sizes = [16, 16], strides = [1, 1]} : vector<16x32xf32> to vector<16x16xf32>
    %129 = tpu.concatenate %41, %84, %127, %42, %85, %128 in 1 : vector<16x32xf32>, vector<16x16xf32>, vector<16x16xf32>, vector<16x32xf32>, vector<16x16xf32>, vector<16x16xf32> -> vector<16x128xf32>
    %130 = arith.truncf %129 : vector<16x128xf32> to vector<16x128xbf16>
    %c0_36 = arith.constant 0 : index
    %c0_37 = arith.constant 0 : index
    %131 = vector.load %arg8[%c0_36, %c0_37] : memref<16x128xbf16, #tpu.memory_space<vmem>>, vector<16x128xbf16>
    tpu.vector_store %arg8[%c0_36, %c0_37], %130 {strides = array<i32>} : memref<16x128xbf16, #tpu.memory_space<vmem>>, vector<16x128xbf16>,
    return
  }
  func.func @transform_0(%arg0: i32) -> (i32, i32) {
    %c0_i32 = arith.constant 0 : i32
    %c0_i32_0 = arith.constant 0 : i32
    return %arg0, %c0_i32 : i32, i32
  }
  func.func @transform_1(%arg0: i32) -> (i32, i32) {
    %c0_i32 = arith.constant 0 : i32
    %c0_i32_0 = arith.constant 0 : i32
    %c0_i32_1 = arith.constant 0 : i32
    return %c0_i32, %c0_i32_0 : i32, i32
  }
  func.func @transform_2(%arg0: i32) -> (i32, i32) {
    %c0_i32 = arith.constant 0 : i32
    %c0_i32_0 = arith.constant 0 : i32
    %c0_i32_1 = arith.constant 0 : i32
    return %c0_i32, %c0_i32_0 : i32, i32
  }
  func.func @transform_3(%arg0: i32) -> (i32, i32) {
    %c0_i32 = arith.constant 0 : i32
    %c0_i32_0 = arith.constant 0 : i32
    %c0_i32_1 = arith.constant 0 : i32
    return %c0_i32, %c0_i32_0 : i32, i32
  }
  func.func @transform_4(%arg0: i32) -> (i32, i32) {
    %c0_i32 = arith.constant 0 : i32
    %c0_i32_0 = arith.constant 0 : i32
    %c0_i32_1 = arith.constant 0 : i32
    return %c0_i32, %c0_i32_0 : i32, i32
  }
  func.func @transform_5(%arg0: i32) -> (i32, i32) {
    %c0_i32 = arith.constant 0 : i32
    %c0_i32_0 = arith.constant 0 : i32
    %c0_i32_1 = arith.constant 0 : i32
    return %c0_i32, %c0_i32_0 : i32, i32
  }
  func.func @transform_6(%arg0: i32) -> (i32, i32) {
    %c0_i32 = arith.constant 0 : i32
    %c0_i32_0 = arith.constant 0 : i32
    %c0_i32_1 = arith.constant 0 : i32
    return %c0_i32, %c0_i32_0 : i32, i32
  }
  func.func @transform_7(%arg0: i32) -> (i32, i32) {
    %c0_i32 = arith.constant 0 : i32
    %c0_i32_0 = arith.constant 0 : i32
    return %arg0, %c0_i32 : i32, i32
  }
}

</mosaic_0001>

<bundles_post_ra>
// kernel: tpu_custom_call.1
= control target key start
LH: loop header
LB: loop body
LE: loop exit
PB: predicated region body
PF: predicated region fallthrough
CT: control target
= control target key end

     0   :  { %v1238_v1 = vmov 0.0   ;;  %vm1239_vm0 = vmmov 0   ;;  %s1430_s0 = inlined_call_operand.vmem [shape: bf16[16,64], index: 0, kind: input, shape index: {}]   ;;  %s1431_s1 = inlined_call_operand.vmem [shape: bf16[64,128], index: 1, kind: input, shape index: {}]   ;;  %s1432_s2 = inlined_call_operand.vmem [shape: f32[2,128], index: 2, kind: input, shape index: {}]   ;;  %s1433_s3 = inlined_call_operand.vmem [shape: bf16[128,64], index: 3, kind: input, shape index: {}]   ;;  %s1434_s4 = inlined_call_operand.vmem [shape: f32[2,64], index: 4, kind: input, shape index: {}]   ;;  %s1435_s5 = inlined_call_operand.vmem [shape: bf16[64,32], index: 5, kind: input, shape index: {}]   ;;  %s1436_s6 = inlined_call_operand.vmem [shape: f32[2,32], index: 6, kind: input, shape index: {}]   ;;  %s1437_s7 = inlined_call_operand.hbm [shape: bf16[16,128], index: 7, kind: output, shape index: {}]  }
   0x1   :  { %v1163_v0 = vld [vmem:[%s1431_s1 + $0x18] sm:$0xff]   ;;  %1026 = vmatprep.subr.bf16.mxu0 %v1238_v1  ;;  %v1164_v2 = vld [vmem:[%s1431_s1 + $0x10] sm:$0xff]   ;;  %1034 = vmatprep.mubr.msk.bf16.mxu0 %vm1239_vm0, %v1238_v1  ;;  %v1165_v3 = vld [vmem:[%s1431_s1 + $0x8] sm:$0xff]  }
   0x2   :  { %1027 = vmatpush3.bf16.msra.mxu0 %v1163_v0  ;;  %v1166_v4 = vld [vmem:[%s1431_s1] sm:$0xff]  }
   0x3   :  { %1028 = vmatprep.subr.bf16.mxu0 %v1238_v1  ;;  %v1167_v5 = vld [vmem:[%s1430_s0] sm:$0xff]  }
   0x6   :  { %1029 = vmatpush3.bf16.msra.mxu0 %v1164_v2 }
   0x7   :  { %1030 = vmatprep.subr.bf16.mxu0 %v1238_v1 }
   0xa   :  { %1031 = vmatpush3.bf16.msra.mxu0 %v1165_v3 }
   0xb   :  { %1032 = vmatprep.subr.bf16.mxu0 %v1238_v1 }
   0xc   :  { %12 = vsyncpa [#allocation3], 0  ;;  %vm72_vm1 = vcmask 523264   ;;  %v39_v6 = vlaneseq  ;;  %v1168_v20 = vld [vmem:[%s1433_s3 + $0x38] sm:$0xff]   ;;  %v1331_v23 = vld [vmem:[%s1432_s2] sm:$0x3] }
   0xd   :  { %v1169_v43 = vld [vmem:[%s1433_s3 + $0x30] sm:$0xff]   ;;  %v1170_v44 = vld [vmem:[%s1433_s3 + $0x28] sm:$0xff]   ;;  %v1171_v45 = vld [vmem:[%s1433_s3 + $0x20] sm:$0xff]   ;;  %s1241_s0 = smov 32   ;;  %vm769_vm5 = vcmask 261120   ;;  %s1243_s12 = smov 48  }
   0xe   :  { %1033 = vmatpush3.bf16.msra.mxu0 %v1166_v4  ;;  %v1311_v7 = vand.u32 127, %v39_v6  ;;  %v1323_v21 = vshrl.u32 %v39_v6, 7  ;;  %v1172_v46 = vld [vmem:[%s1433_s3 + $0x18] sm:$0xff]   ;;  %v1173_v47 = vld [vmem:[%s1433_s3 + $0x10] sm:$0xff]   ;;  %v1174_v48 = vld [vmem:[%s1433_s3 + $0x8] sm:$0xff]   ;;  %vm895_vm6 = vcmask 392192  }
   0xf   :  { %1073 = vmatprep.subr.bf16.mxu0 %v1238_v1  ;;  %v1175_v49 = vld [vmem:[%s1433_s3] sm:$0xff]   ;;  %vm900_vm7 = vcmask 785408   ;;  %vm903_vm8 = vcmask 916480   ;;  %s1244_s2 = smov [#allocation2]  }
  0x10   :  { %vm198_vm2 = vcmp.lt.s32.totalorder %v1311_v7, 64  ;;  %vm506_vm3 = vcmp.lt.s32.totalorder %v1311_v7, 32  ;;  %v1326_v22 = vsub.s32 0, %v1323_v21  ;;  %v1372_v56 = vsub.s32 1, %v1323_v21  ;;  %v373_v2 = vld [vmem:[%s1434_s4] sm:$0x3] }
  0x11   :  { %1035 = vmatmul.mubr.msk.bf16.vlgmr.msra.gmra.mxu0 %vm72_vm1, %v1167_v5  ;;  %v940_v8 = vsel %vm198_vm2, 1.0, %v1238_v1  ;;  %v951_v13 = vsel %vm506_vm3, 1.0, %v1238_v1  ;;  %vm747_vm4 = vcmp.lt.s32.totalorder %v1311_v7, 16  ;;  %s921_s13 = sshll.u32 %s1244_s2, 4  ;;  %s922_s13 = int_to_ptr.vmem [resolvable:$true] %s921_s13 }
  0x12   :  { %1089 = vmatprep.mubr.msk.bf16.mxu0 %vm1239_vm0, %v1238_v1  ;;  %v209_v9 = vmul.f32 0.0, %v940_v8  ;;  %v233_v10 = vsub.f32 1.0, %v940_v8  ;;  %v525_v15 = vsub.f32 1.0, %v951_v13  ;;  %v513_v18 = vmul.f32 0.0, %v951_v13  ;;  %1074 = vmatpush3.bf16.msra.mxu0 %v1168_v20  ;;  %s1216_s14 = scalar_lea.vmem %s922_s13, 128  ;;  %p1221_p1 = scmp.lt.s32.totalorder %s922_s13, %s922_s13 }
  0x13   :  { %1075 = vmatprep.subr.bf16.mxu0 %v1238_v1  ;;  %v42_v24 = vrot.slane %v1331_v23, %v1326_v22  ;;  %v354_v58 = vrot.slane %v1331_v23, %v1372_v56  ;;  %v378_v3 = vrot.slane %v373_v2, %v1326_v22  ;;  %p1217_p0 = scmp.ne.s32.totalorder %s922_s13, %s1216_s14  ;;  %p1222_p2 = scmp.lt.s32.totalorder %s1216_s14, %s1216_s14 }
  0x14   :  { %v258_v11 = vadd.f32 %v233_v10, %v209_v9  ;;  %v234_v12 = vmul.f32 0.0, %v233_v10  ;;  %v526_v16 = vmul.f32 0.0, %v525_v15  ;;  %v538_v19 = vadd.f32 %v525_v15, %v513_v18 }
  0x15   :  { %p1223_p3 = por %p1222_p2, %p1221_p1 }
  0x16   :  { %1038 = vmatprep.subr.mxu1 %v258_v11  ;;  %v250_v14 = vadd.f32 %v940_v8, %v234_v12  ;;  %v1317_v17 = vadd.f32 %v951_v13, %v526_v16  ;;  %1076 = vmatpush3.bf16.msra.mxu0 %v1169_v43  ;;  %v961_v43 = vsel %vm747_vm4, 1.0, %v1238_v1 }
  0x17   :  { %1039 = vmatpush3.msra.mxu1 %v258_v11  ;;  %1077 = vmatprep.subr.bf16.mxu0 %v1238_v1  ;;  %p1224_p4 = pnand %p1223_p3, %p1217_p0 }
  0x18   :  { %1040 = vmatprep.subr.mxu1 %v258_v11 }
  0x19   :  { %1041 = vmatpush3.msra.mxu1 %v258_v11 }
  0x1a   :  { %1042 = vmatprep.subr.mxu1 %v258_v11  ;;  %1078 = vmatpush3.bf16.msra.mxu0 %v1170_v44  ;;  %v752_v44 = vmul.f32 0.0, %v961_v43 }
  0x1b   :  { %1043 = vmatpush3.msra.mxu1 %v258_v11  ;;  %1079 = vmatprep.subr.bf16.mxu0 %v1238_v1 }
  0x1c   :  { %1044 = vmatprep.subr.mxu1 %v258_v11 }
  0x1d   :  { %1045 = vmatpush3.msra.mxu1 %v258_v11 }
  0x1e   :  { %1046 = vmatprep.subr.mxu1 %v258_v11  ;;  %1080 = vmatpush3.bf16.msra.mxu0 %v1171_v45  ;;  %v758_v45 = vsub.f32 1.0, %v961_v43 }
  0x1f   :  { %1047 = vmatpush3.msra.mxu1 %v258_v11  ;;  %1081 = vmatprep.subr.bf16.mxu0 %v1238_v1 }
  0x20   :  { %1048 = vmatprep.subr.mxu1 %v258_v11 }
  0x21   :  { %1049 = vmatpush3.msra.mxu1 %v258_v11 }
  0x22   :  { %1050 = vmatprep.subr.mxu1 %v258_v11  ;;  %1082 = vmatpush3.bf16.msra.mxu0 %v1172_v46  ;;  %v765_v46 = vadd.f32 %v758_v45, %v752_v44 }
  0x23   :  { %1051 = vmatpush3.msra.mxu1 %v258_v11  ;;  %1083 = vmatprep.subr.bf16.mxu0 %v1238_v1 }
  0x24   :  { %1052 = vmatprep.subr.mxu1 %v258_v11 }
  0x25   :  { %1053 = vmatpush3.msra.mxu1 %v258_v11 }
  0x26   :  { %1054 = vmatprep.subr.mxu1 %v250_v14  ;;  %1084 = vmatpush3.bf16.msra.mxu0 %v1173_v47  ;;  %v759_v47 = vmul.f32 0.0, %v758_v45 }
  0x27   :  { %1055 = vmatpush3.msra.mxu1 %v250_v14  ;;  %1085 = vmatprep.subr.bf16.mxu0 %v1238_v1 }
  0x28   :  { %1056 = vmatprep.subr.mxu1 %v250_v14 }
  0x29   :  { %1057 = vmatpush3.msra.mxu1 %v250_v14 }
  0x2a   :  { %1058 = vmatprep.subr.mxu1 %v250_v14  ;;  %1086 = vmatpush3.bf16.msra.mxu0 %v1174_v48  ;;  %v763_v48 = vadd.f32 %v961_v43, %v759_v47 }
  0x2b   :  { %1059 = vmatpush3.msra.mxu1 %v250_v14  ;;  %1087 = vmatprep.subr.bf16.mxu0 %v1238_v1 }
  0x2c   :  { %1060 = vmatprep.subr.mxu1 %v250_v14 }
  0x2d   :  { %1061 = vmatpush3.msra.mxu1 %v250_v14 }
  0x2e   :  { %1062 = vmatprep.subr.mxu1 %v250_v14  ;;  %1088 = vmatpush3.bf16.msra.mxu0 %v1175_v49  ;;  %v647_v49 = vld [vmem:[%s1436_s6] sm:$0x3]  ;;  %s1242_s6 = smov 96  }
  0x2f   :  { %1063 = vmatpush3.msra.mxu1 %v250_v14  ;;  %1112 = vmatprep.subr.bf16.mxu0 %v1238_v1  ;;  %v652_v7 = vrot.slane %v647_v49, %v1326_v22 }
  0x30   :  { %1064 = vmatprep.subr.mxu1 %v250_v14 }
  0x31   :  { %1065 = vmatpush3.msra.mxu1 %v250_v14 }
  0x32   :  { %1066 = vmatprep.subr.mxu1 %v250_v14 }
  0x33   :  { %1067 = vmatpush3.msra.mxu1 %v250_v14 }
  0x34   :  { %1068 = vmatprep.subr.mxu1 %v250_v14 }
  0x35   :  { %1069 = vmatpush3.msra.mxu1 %v250_v14 }
  0x36   :  { %1093 = vmatprep.subr.mxu1 %v538_v19 }
  0xd1   :  { %v110_v25 = vpop.f32.mrf.mxu0 }
  0xd2   :  { %v111_v26 = vadd.f32 %v110_v25, %v42_v24  ;;  %v1177_v25 = vld [vmem:[%s1435_s5 + $0x10] sm:$0xff]  }
  0xd3   :  { %v1036_v27 = vpop.f32.mrf.mxu0 }
  0xd4   :  { %v938_v28 = vmul.f32 -1.442695, %v111_v26  ;;  %v1179_v27 = vld [vmem:[%s1435_s5] sm:$0xff]  }
  0xd5   :  { %v113_v29 = vpop.f32.mrf.mxu0 }
  0xd6   :  { %1180 = vpow2.f32 %v938_v28  ;;  %v114_v30 = vadd.f32 %v113_v29, %v42_v24  ;;  %v1176_v24 = vld [vmem:[%s1435_s5 + $0x18] sm:$0xff]  }
  0xd7   :  { %v1037_v31 = vpop.f32.mrf.mxu0 }
  0xd8   :  { %v939_v32 = vmul.f32 -1.442695, %v114_v30 }
  0xda   :  { %1182 = vpow2.f32 %v939_v32 }
  0xe3   :  { %v1181_v33 = vpop.eup %1180 }
  0xe4   :  { %v123_v34 = vadd.f32 1.0, %v1181_v33 }
  0xe6   :  { %1184 = vrcp.f32 %v123_v34 }
  0xe7   :  { %v1183_v35 = vpop.eup %1182 }
  0xe8   :  { %v124_v36 = vadd.f32 1.0, %v1183_v35  ;;  %v636_v35 = vrot.slane %v373_v2, %v1372_v56 }
  0xea   :  { %1186 = vrcp.f32 %v124_v36 }
  0xf3   :  { %v1185_v37 = vpop.eup %1184 }
  0xf4   :  { %v129_v38 = vmul.f32 %v1185_v37, %v111_v26  ;;  %v1178_v26 = vld [vmem:[%s1435_s5 + $0x8] sm:$0xff]   ;;  %s1240_s5 = smov 64  }
  0xf6   :  { %v266_v39 = vmul.f32 %v129_v38, %v129_v38 }
  0xf7   :  { %v1187_v40 = vpop.eup %1186 }
  0xf8   :  { %v130_v41 = vmul.f32 %v1187_v40, %v114_v30  ;;  %1070 = vmatprep.mubr.f32.mxu1 %v266_v39 }
  0xfa   :  { %v267_v42 = vmul.f32 %v130_v41, %v130_v41 }
  0xfc   :  { %1071 = vmatmul.mubr.f32.vlgmr.msra.gmra.mxu1 %v267_v42 }
  0xfd   :  { %1094 = vmatpush3.msra.mxu1 %v538_v19 }
  0xfe   :  { %1095 = vmatprep.subr.mxu1 %v538_v19 }
  0xff   :  { %1096 = vmatpush3.msra.mxu1 %v538_v19 }
 0x100   :  { %1097 = vmatprep.subr.mxu1 %v538_v19 }
 0x101   :  { %1098 = vmatpush3.msra.mxu1 %v538_v19 }
 0x102   :  { %1099 = vmatprep.subr.mxu1 %v538_v19 }
 0x103   :  { %1100 = vmatpush3.msra.mxu1 %v538_v19 }
 0x104   :  { %1101 = vmatprep.subr.mxu1 %v1317_v17 }
 0x105   :  { %1102 = vmatpush3.msra.mxu1 %v1317_v17 }
 0x106   :  { %1103 = vmatprep.subr.mxu1 %v1317_v17 }
 0x107   :  { %1104 = vmatpush3.msra.mxu1 %v1317_v17 }
 0x108   :  { %1105 = vmatprep.subr.mxu1 %v1317_v17 }
 0x109   :  { %1106 = vmatpush3.msra.mxu1 %v1317_v17 }
 0x10a   :  { %1107 = vmatprep.subr.mxu1 %v1317_v17 }
 0x10b   :  { %1108 = vmatpush3.msra.mxu1 %v1317_v17 }
 0x10c   :  { %1124 = vmatprep.subr.mxu1 %v765_v46 }
 0x1bc   :  { %v1072_v50 = vpop.f32.mrf.mxu1 }
 0x1bd   :  { %v344_v51 = vmul.f32 0.015625, %v1072_v50 }
 0x1be   :  { %v334_v52 = vpop.f32.mrf.mxu1 }
 0x1bf   :  { %v346_v53 = vadd.f32 1e-06, %v344_v51  ;;  %v343_v54 = vmul.f32 0.015625, %v334_v52 }
 0x1c1   :  { %1188 = vrsqrt.f32 %v346_v53  ;;  %v345_v55 = vadd.f32 1e-06, %v343_v54 }
 0x1c3   :  { %1190 = vrsqrt.f32 %v345_v55 }
 0x1ce   :  { %v1189_v57 = vpop.eup %1188 }
 0x1cf   :  { %v350_v59 = vmul.f32 %v1189_v57, %v130_v41 }
 0x1d0   :  { %v1191_v60 = vpop.eup %1190 }
 0x1d1   :  { %v349_v61 = vmul.f32 %v1191_v60, %v129_v38  ;;  %v1378_v63 = vmul.f32 %v354_v58, %v350_v59 }
 0x1d3   :  { %v1376_v62 = vmul.f32 %v354_v58, %v349_v61 }
 0x1d5   :  { %v374_v0 = vpack.c.bf16 %v1378_v63, %v1376_v62 }
 0x1d7   :  { %1090 = vmatmul.mubr.bf16.vlgmr.msra.gmra.mxu0 %v374_v0 }
 0x1d8   :  { %1120 = vmatprep.mubr.msk.bf16.mxu0 %vm1239_vm0, %v1238_v1  ;;  %1113 = vmatpush3.bf16.msra.mxu0 %v1176_v24 }
 0x1d9   :  { %1114 = vmatprep.subr.bf16.mxu0 %v1238_v1 }
 0x1dc   :  { %1115 = vmatpush3.bf16.msra.mxu0 %v1177_v25 }
 0x1dd   :  { %1116 = vmatprep.subr.bf16.mxu0 %v1238_v1 }
 0x1e0   :  { %1117 = vmatpush3.bf16.msra.mxu0 %v1178_v26 }
 0x1e1   :  { %1118 = vmatprep.subr.bf16.mxu0 %v1238_v1 }
 0x1e4   :  { %1119 = vmatpush3.bf16.msra.mxu0 %v1179_v27 }
 0x297   :  { %v461_v4 = vpop.f32.mrf.mxu0 }
 0x298   :  { %v462_v5 = vadd.f32 %v461_v4, %v378_v3 }
 0x299   :  { %v1091_v6 = vpop.f32.mrf.mxu0 }
 0x29a   :  { %v949_v8 = vmul.f32 -1.442695, %v462_v5 }
 0x29b   :  { %v464_v9 = vpop.f32.mrf.mxu0 }
 0x29c   :  { %1192 = vpow2.f32 %v949_v8  ;;  %v465_v10 = vadd.f32 %v464_v9, %v378_v3 }
 0x29d   :  { %v1092_v11 = vpop.f32.mrf.mxu0 }
 0x29e   :  { %v950_v12 = vmul.f32 -1.442695, %v465_v10 }
 0x2a0   :  { %1194 = vpow2.f32 %v950_v12 }
 0x2a9   :  { %v1193_v13 = vpop.eup %1192 }
 0x2aa   :  { %v474_v14 = vadd.f32 1.0, %v1193_v13 }
 0x2ac   :  { %1196 = vrcp.f32 %v474_v14  ;;  %v862_v14 = vrot.slane %v647_v49, %v1372_v56 }
 0x2ad   :  { %v1195_v15 = vpop.eup %1194 }
 0x2ae   :  { %v475_v16 = vadd.f32 1.0, %v1195_v15 }
 0x2b0   :  { %1198 = vrcp.f32 %v475_v16 }
 0x2b9   :  { %v1197_v17 = vpop.eup %1196 }
 0x2ba   :  { %v480_v18 = vmul.f32 %v1197_v17, %v462_v5 }
 0x2bc   :  { %v542_v19 = vmul.f32 %v480_v18, %v480_v18 }
 0x2bd   :  { %v1199_v20 = vpop.eup %1198 }
 0x2be   :  { %v481_v21 = vmul.f32 %v1199_v20, %v465_v10  ;;  %1109 = vmatprep.mubr.msk.f32.mxu1 %vm72_vm1, %v542_v19 }
 0x2c0   :  { %v543_v23 = vmul.f32 %v481_v21, %v481_v21 }
 0x2c2   :  { %1110 = vmatmul.mubr.msk.f32.vlgmr.msra.gmra.mxu1 %vm72_vm1, %v543_v23 }
 0x2c3   :  { %1125 = vmatpush3.msra.mxu1 %v765_v46 }
 0x2c4   :  { %1126 = vmatprep.subr.mxu1 %v765_v46 }
 0x2c5   :  { %1127 = vmatpush3.msra.mxu1 %v765_v46 }
 0x2c6   :  { %1128 = vmatprep.subr.mxu1 %v763_v48 }
 0x2c7   :  { %1129 = vmatpush3.msra.mxu1 %v763_v48 }
 0x2c8   :  { %1130 = vmatprep.subr.mxu1 %v763_v48 }
 0x2c9   :  { %1131 = vmatpush3.msra.mxu1 %v763_v48 }
 0x382   :  { %v1111_v28 = vpop.f32.mrf.mxu1 }
 0x383   :  { %v626_v29 = vmul.f32 0.03125, %v1111_v28 }
 0x384   :  { %v616_v30 = vpop.f32.mrf.mxu1 }
 0x385   :  { %v628_v31 = vadd.f32 1e-06, %v626_v29  ;;  %v625_v32 = vmul.f32 0.03125, %v616_v30 }
 0x387   :  { %1200 = vrsqrt.f32 %v628_v31  ;;  %v627_v33 = vadd.f32 1e-06, %v625_v32 }
 0x389   :  { %1202 = vrsqrt.f32 %v627_v33 }
 0x394   :  { %v1201_v34 = vpop.eup %1200 }
 0x395   :  { %v632_v36 = vmul.f32 %v1201_v34, %v481_v21 }
 0x396   :  { %v1203_v37 = vpop.eup %1202 }
 0x397   :  { %v631_v38 = vmul.f32 %v1203_v37, %v480_v18  ;;  %v638_v40 = vmul.f32 %v636_v35, %v632_v36 }
 0x399   :  { %v637_v39 = vmul.f32 %v636_v35, %v631_v38 }
 0x39b   :  { %v1153_v41 = vpack.i.bf16 %v638_v40, %v637_v39  ;;  %v648_v42 = vpack.c.bf16 %v638_v40, %v637_v39 }
 0x39d   :  { %1154 = vrot.lane.b32.xlu1 %v1153_v41, %s1240_s5  ;;  %1144 = vrot.lane.b32.xlu0 %v1153_v41, %s1241_s0 }
 0x39e   :  { %1121 = vmatmul.mubr.msk.bf16.vlgmr.msra.gmra.mxu0 %vm72_vm1, %v648_v42 }
 0x40f   :  { %v1145_v21 = vpop.permute.xlu0 %1144  ;;  %v1155_v23 = vpop.permute.xlu1 %1154 }
 0x410   :  { %v1147_v24 = vunpack.i.h.bf16 %v1145_v21  ;;  %v1146_v25 = vunpack.i.l.bf16 %v1145_v21  ;;  %v1157_v56 = vunpack.i.h.bf16 %v1155_v23  ;;  %v1156_v32 = vunpack.i.l.bf16 %v1155_v23 }
 0x412   :  { %v893_v30 = vsel %vm769_vm5, %v1376_v62, %v1146_v25  ;;  %v894_v31 = vsel %vm769_vm5, %v1378_v63, %v1147_v24 }
 0x45e   :  { %v714_v1 = vpop.f32.mrf.mxu0 }
 0x45f   :  { %v715_v50 = vadd.f32 %v714_v1, %v652_v7 }
 0x460   :  { %v1122_v51 = vpop.f32.mrf.mxu0 }
 0x461   :  { %v959_v52 = vmul.f32 -1.442695, %v715_v50 }
 0x462   :  { %v717_v53 = vpop.f32.mrf.mxu0 }
 0x463   :  { %1204 = vpow2.f32 %v959_v52  ;;  %v718_v54 = vadd.f32 %v717_v53, %v652_v7 }
 0x464   :  { %v1123_v55 = vpop.f32.mrf.mxu0 }
 0x465   :  { %v960_v57 = vmul.f32 -1.442695, %v718_v54 }
 0x467   :  { %1206 = vpow2.f32 %v960_v57 }
 0x470   :  { %v1205_v58 = vpop.eup %1204 }
 0x471   :  { %v727_v59 = vadd.f32 1.0, %v1205_v58 }
 0x473   :  { %1208 = vrcp.f32 %v727_v59 }
 0x474   :  { %v1207_v60 = vpop.eup %1206 }
 0x475   :  { %v728_v61 = vadd.f32 1.0, %v1207_v60 }
 0x477   :  { %1210 = vrcp.f32 %v728_v61 }
 0x480   :  { %v1209_v0 = vpop.eup %1208 }
 0x481   :  { %v733_v2 = vmul.f32 %v1209_v0, %v715_v50 }
 0x483   :  { %v767_v3 = vmul.f32 %v733_v2, %v733_v2 }
 0x484   :  { %v1211_v22 = vpop.eup %1210 }
 0x485   :  { %v734_v4 = vmul.f32 %v1211_v22, %v718_v54  ;;  %1132 = vmatprep.mubr.msk.f32.mxu1 %vm769_vm5, %v767_v3 }
 0x487   :  { %v768_v5 = vmul.f32 %v734_v4, %v734_v4 }
 0x489   :  { %1133 = vmatmul.mubr.msk.f32.vlgmr.msra.gmra.mxu1 %vm769_vm5, %v768_v5 }
 0x549   :  { %v1134_v6 = vpop.f32.mrf.mxu1 }
 0x54a   :  { %v852_v8 = vmul.f32 0.0625, %v1134_v6 }
 0x54b   :  { %v842_v9 = vpop.f32.mrf.mxu1 }
 0x54c   :  { %v854_v10 = vadd.f32 1e-06, %v852_v8  ;;  %v851_v11 = vmul.f32 0.0625, %v842_v9 }
 0x54e   :  { %1212 = vrsqrt.f32 %v854_v10  ;;  %v853_v12 = vadd.f32 1e-06, %v851_v11 }
 0x550   :  { %1214 = vrsqrt.f32 %v853_v12 }
 0x55b   :  { %v1213_v13 = vpop.eup %1212 }
 0x55c   :  { %v858_v15 = vmul.f32 %v1213_v13, %v734_v4 }
 0x55d   :  { %v1215_v16 = vpop.eup %1214 }
 0x55e   :  { %v857_v17 = vmul.f32 %v1215_v16, %v733_v2  ;;  %v864_v19 = vmul.f32 %v862_v14, %v858_v15 }
 0x560   :  { %v863_v18 = vmul.f32 %v862_v14, %v857_v17 }
 0x562   :  { %v1158_v20 = vpack.i.bf16 %v864_v19, %v863_v18 }
 0x564   :  { %1159 = vrot.lane.b32.xlu1 %v1158_v20, %s1242_s6  ;;  %1149 = vrot.lane.b32.xlu0 %v1158_v20, %s1243_s12 }
 0x5d6   :  { %v1150_v26 = vpop.permute.xlu0 %1149  ;;  %v1160_v27 = vpop.permute.xlu1 %1159 }
 0x5d7   :  { %v1152_v28 = vunpack.i.h.bf16 %v1150_v26  ;;  %v1151_v29 = vunpack.i.l.bf16 %v1150_v26  ;;  %v1162_v35 = vunpack.i.h.bf16 %v1160_v27  ;;  %v1161_v36 = vunpack.i.l.bf16 %v1160_v27 }
 0x5d9   :  { %v897_v33 = vsel %vm895_vm6, %v894_v31, %v1152_v28  ;;  %v896_v34 = vsel %vm895_vm6, %v893_v30, %v1151_v29 }
 0x5da   :  { %v899_v37 = vsel %vm72_vm1, %v897_v33, %v1378_v63  ;;  %v898_v38 = vsel %vm72_vm1, %v896_v34, %v1376_v62 }
 0x5db   :  { %v901_v39 = vsel %vm900_vm7, %v898_v38, %v1156_v32  ;;  %v902_v40 = vsel %vm900_vm7, %v899_v37, %v1157_v56 }
 0x5dc   :  { %v904_v41 = vsel %vm903_vm8, %v901_v39, %v1161_v36  ;;  %v905_v42 = vsel %vm903_vm8, %v902_v40, %v1162_v35 }
 0x5dd   :  { %v971_v43 = vpack.c.bf16 %v905_v42, %v904_v41 }
 0x5df   :  { %972 = vst [vmem:[#allocation2] sm:$0xff] %v971_v43  }
 0x5e0   :  { %1227 = shalt.err (!%p1224_p4)
}
 0x5e1   :  { %s1245_s15 = smov 4  }
 0x5e2   :  { %927 = dma.vmem_to_hbm [thread:$0]  %s922_s13, 128, %s1437_s7, [#allocation3], %s1240_s5, %s1240_s5, %s1245_s15  }
 0x5e3   :  { %1236 = dma.done.wait [#allocation3], 128  }
 0x5e4   :  { %1237 = vsyncadd [#allocation3], 4294967168 }
 0x5e5   :  { %931 = vsyncpa [#allocation3], 1 }

</bundles_post_ra>
